<compile_context>
chip_gen: v6e
topology: v6e:2x2x1
jax: 0.10.0
libtpu: 0.0.40
codegen_flags: <defaults>
</compile_context>

<pallas_src>
import jax
import jax.numpy as jnp
from jax.experimental import pallas as pl
from jax.experimental.pallas import tpu as pltpu

_LANE = 128
_MAX_COLS = 8192
_MAX_BLOCK_BYTES = 2 * 1024 * 1024  # 2 MiB blocks -> ~8 MiB pipelined VMEM worst case


def _identity_kernel(x_ref, o_ref):
    # NoOp forward: straight VMEM tile copy.
    o_ref[...] = x_ref[...]


def _plan(n, itemsize):
    """Pick (rows, cols, tile_rows, padded_n) for a lane-dense tiled copy."""
    pack = max(8, 32 // itemsize)  # sublane packing: 8 for f32, 16 for bf16, 32 for int8
    cols = _LANE
    # Grow cols (always a multiple of 128) while at least 2 packed row-groups remain.
    while cols * 2 <= _MAX_COLS and (cols * 2) * pack * 2 <= n:
        cols *= 2
    chunk = cols * pack
    padded_n = ((n + chunk - 1) // chunk) * chunk
    rows = padded_n // cols  # multiple of `pack` by construction
    max_tile_rows = max(pack, (_MAX_BLOCK_BYTES // (cols * itemsize)) // pack * pack)
    tile_rows = pack
    # Grow the block toward the VMEM cap, but keep >=2 grid steps when we can
    # (lets a parallel grid axis shard across v7x's two TensorCores).
    while (tile_rows * 2 <= max_tile_rows
           and rows % (tile_rows * 2) == 0
           and rows // (tile_rows * 2) >= 2):
        tile_rows *= 2
    return rows, cols, tile_rows, padded_n


@jax.jit
def conv_module_forward(x):
    """Pallas implementation of the (NoOp-configured) ConvModule.forward(x) -> x.

    NOTE(perf): the truly optimal NoOp is `return x` (zero HBM traffic). The kernel
    below exists because a Pallas kernel is required; it aliases its output onto its
    input and uses large lane-dense blocks to run at HBM roofline when it does run.
    """
    orig_shape = x.shape
    n = x.size
    itemsize = jnp.dtype(x.dtype).itemsize
    rows, cols, tile_rows, padded_n = _plan(n, itemsize)

    xf = x.reshape(-1)
    if padded_n != n:
        xf = jnp.pad(xf, (0, padded_n - n))
    x2 = xf.reshape(rows, cols)

    out = pl.pallas_call(
        _identity_kernel,
        out_shape=jax.ShapeDtypeStruct((rows, cols), x.dtype),
        grid_spec=pltpu.PrefetchScalarGridSpec(
            num_scalar_prefetch=0,
            grid=(rows // tile_rows,),
            in_specs=[pl.BlockSpec((tile_rows, cols), lambda i: (i, 0))],
            out_specs=pl.BlockSpec((tile_rows, cols), lambda i: (i, 0)),
        ),
        compiler_params=pltpu.CompilerParams(
            dimension_semantics=("parallel",),
        ),
        input_output_aliases={0: 0},
    )(x2)

    out = out.reshape(-1)
    if padded_n != n:
        out = out[:n]
    return out.reshape(orig_shape)


if __name__ == "__main__":
    key = jax.random.PRNGKey(0)
    # Small NCHW-style tensor: batch=2, channels=4, spatial=16x16.
    x = jax.random.normal(key, (2, 4, 16, 16), dtype=jnp.float32)

    y = conv_module_forward(x)
    y = jax.block_until_ready(y)

    assert y.shape == x.shape and y.dtype == x.dtype
    assert bool(jnp.array_equal(y, x))
    print("KERNEL_OK")
</pallas_src>

<mosaic_0001>
module attributes {stable_mosaic.version = 11 : i64} {
  func.func @_identity_kernel(%arg0: i32, %arg1: memref<8x128xf32, #tpu.memory_space<vmem>>, %arg2: memref<8x128xf32, #tpu.memory_space<vmem>>) attributes {dimension_semantics = [#tpu.dimension_semantics<parallel>], iteration_bounds = array<i64: 2>, scalar_prefetch = 0 : i64, scratch_operands = 0 : i64, tpu.core_type = #tpu.core_type<tc>, window_params = [{transform_indices = @transform_0, window_bounds = array<i64: 8, 128>}, {transform_indices = @transform_1, window_bounds = array<i64: 8, 128>}]} {
    %c0 = arith.constant 0 : index
    %c0_0 = arith.constant 0 : index
    %0 = vector.load %arg1[%c0, %c0_0] : memref<8x128xf32, #tpu.memory_space<vmem>>, vector<8x128xf32>
    %c0_1 = arith.constant 0 : index
    %c0_2 = arith.constant 0 : index
    %1 = vector.load %arg2[%c0_1, %c0_2] : memref<8x128xf32, #tpu.memory_space<vmem>>, vector<8x128xf32>
    tpu.vector_store %arg2[%c0_1, %c0_2], %0 {strides = array<i32>} : memref<8x128xf32, #tpu.memory_space<vmem>>, vector<8x128xf32>,
    return
  }
  func.func @transform_0(%arg0: i32) -> (i32, i32) {
    %c0_i32 = arith.constant 0 : i32
    %c0_i32_0 = arith.constant 0 : i32
    return %arg0, %c0_i32 : i32, i32
  }
  func.func @transform_1(%arg0: i32) -> (i32, i32) {
    %c0_i32 = arith.constant 0 : i32
    %c0_i32_0 = arith.constant 0 : i32
    return %arg0, %c0_i32 : i32, i32
  }
}

</mosaic_0001>

<bundles_post_ra>
// kernel: conv_module_forward.1
= control target key start
LH: loop header
LB: loop body
LE: loop exit
PB: predicated region body
PF: predicated region fallthrough
CT: control target
= control target key end

     0   :  { %s188_s6 = smov 0   ;;  %s208_s0 = inlined_call_operand.vmem [shape: f32[16,128], index: 0, kind: input, shape index: {}, may-alias: {0,1}]   ;;  %s209_s1 = inlined_call_operand.vmem [shape: f32[16,128], index: 1, kind: output, shape index: {}, may-alias: {0,1}]  }
   0x1 LB: > { %s167_s7 = sadd.s32 4294967295, %s190_s6   ;;  %p171_p0 = scmp.ge.s32.totalorder %s190_s6, 1  ;;  %s190_s6 = sphi %s188_s6, %s11_s6  }
   0x2   : > { %p86_p1 = scmp.lt.s32.totalorder %s190_s6, 3 }
   0x4   : > { %p87_p2 = pnand %p171_p0, %p86_p1 }
   0x5   : > { %p104_p3 = scmp.lt.s32.totalorder (!%p87_p2), %s167_s7, 1 }
   0x6   : > { %90 = sbr.rel (%p87_p2) target bundleno = 16 (0x10), region = 24 }
   0xb   : > { %s211_s7 = smov (!%p104_p3, %s167_s7), 1 }
   0xc   : > { %s172_s8 = sshll.u32 %s211_s7, 3 }
   0xd   : > { %s107_s11 = scalar_lea.vmem %s208_s0, %s172_s8  ;;  %s111_s14 = scalar_lea.vmem %s209_s1, %s172_s8 }
   0xe   : > { %v112_v0 = vld [vmem:[%s107_s11] sm:$0xff] }
   0xf   : > { %113 = vst [vmem:[%s111_s14] sm:$0xff] %v112_v0 }
  0x10 PF: > { %s11_s6 = sadd.s32 1, %s190_s6  }
  0x11   : > { %p8_p4 = scmp.ge.s32.totalorder %s11_s6, 4  }
  0x13   :  { %10 = sbr.rel (!%p8_p4) target bundleno = 1 (0x1), region = 54 }

</bundles_post_ra>
